<compile_context>
chip_gen: v7x
topology: tpu7x:2x2x1
jax: 0.10.0
libtpu: 0.0.40
codegen_flags: <defaults>
</compile_context>

<pallas_src>
import functools

import jax
import jax.numpy as jnp
import numpy as np
from jax.experimental import pallas as pl
from jax.experimental.pallas import tpu as pltpu


# ----------------------------------------------------------------------------
# Kernel
# ----------------------------------------------------------------------------
def _transweigh_joint_kernel(w1_ref, w2_ref, ttop_ref, tbot_ref, tbias_ref,
                             comb_ref, cbias_ref,
                             composed_ref, rep1_ref, rep2_ref,
                             *, normalize: bool, D: int):
    # Stage 1: transformed = tanh(w1 @ T_top + w2 @ T_bot + b)  -> [TB, T*D]
    # (equivalent to einsum('bi,tij->btj') over uv = cat(w1, w2), without the
    #  lane-axis concatenate)
    t = jnp.dot(w1_ref[...], ttop_ref[...], preferred_element_type=jnp.float32)
    t = t + jnp.dot(w2_ref[...], tbot_ref[...], preferred_element_type=jnp.float32)
    t = jnp.tanh(t + tbias_ref[...])

    # Stage 2 (fused): [TB, T*D] @ [T*D, 2D] + bias  -> [TB, 2D]
    # columns 0:D are representation_1, columns D:2D are representation_2.
    r = jnp.dot(t, comb_ref[...], preferred_element_type=jnp.float32) + cbias_ref[...]
    r1 = r[:, :D]
    r2 = r[:, D:]

    def _l2_normalize(x):
        # matches torch.nn.functional.normalize(p=2, dim=1, eps=1e-12)
        norm = jnp.sqrt(jnp.sum(x * x, axis=1, keepdims=True))
        inv = pl.reciprocal(jnp.maximum(norm, 1e-12), approx=False)
        return x * inv

    if normalize:
        r1 = _l2_normalize(r1)
        r2 = _l2_normalize(r2)

    composed = r1 + r2
    if normalize:
        composed = _l2_normalize(composed)

    composed_ref[...] = composed.astype(composed_ref.dtype)
    rep1_ref[...] = r1.astype(rep1_ref.dtype)
    rep2_ref[...] = r2.astype(rep2_ref.dtype)


# ----------------------------------------------------------------------------
# One-time parameter re-layout (hoisted out of the per-call path)
# ----------------------------------------------------------------------------
def prepare_transweigh_params(raw_params):
    """Re-lay out the PyTorch-shaped parameters once into matmul-ready form."""
    T, twoD, D = raw_params["transformation_tensor"].shape
    assert twoD == 2 * D
    # [T, 2D, D] -> [2D, T*D], then split into the w1-half and the w2-half.
    trans_mat = jnp.transpose(raw_params["transformation_tensor"], (1, 0, 2)).reshape(2 * D, T * D)
    ttop = trans_mat[:D, :]                                   # [D, T*D]  (w1 rows)
    tbot = trans_mat[D:, :]                                   # [D, T*D]  (w2 rows)
    tbias = raw_params["transformation_bias"].reshape(1, T * D)
    # Fuse the two combining tensors along the output dim -> one MXU pass.
    comb = jnp.concatenate(
        [raw_params["combining_tensor_1"].reshape(T * D, D),
         raw_params["combining_tensor_2"].reshape(T * D, D)], axis=1)   # [T*D, 2D]
    cbias = jnp.concatenate(
        [raw_params["combining_bias_1"].reshape(1, D),
         raw_params["combining_bias_2"].reshape(1, D)], axis=1)         # [1, 2D]
    return {
        "ttop": ttop, "tbot": tbot, "tbias": tbias,
        "comb": comb, "cbias": cbias, "D": D, "T": T,
    }


# ----------------------------------------------------------------------------
# Wrapper
# ----------------------------------------------------------------------------
def transweigh_joint_ranker_forward(w1, w2, prepared, *, normalize_embeddings):
    """Runs the TransweighJointRanker forward pass (eval mode) on TPU."""
    B, D = w1.shape
    T = prepared["T"]
    TD = T * D

    # Batch tile: whole batch if small; 256-row tiles for large batches
    # (fills MXU rows on v6e/v7x and shards across TCs via "parallel").
    TB = B if B <= 256 else 256
    grid = (pl.cdiv(B, TB),)

    batch_spec = pl.BlockSpec((TB, D), lambda i: (i, 0))
    # Weights: full block, always block 0 -> stay VMEM-resident across the grid.
    wspec = lambda shape: pl.BlockSpec(shape, lambda i: (0, 0))

    kernel = functools.partial(_transweigh_joint_kernel,
                               normalize=normalize_embeddings, D=D)

    out_shapes = (
        jax.ShapeDtypeStruct((B, D), jnp.float32),  # composed_phrase
        jax.ShapeDtypeStruct((B, D), jnp.float32),  # representation_1
        jax.ShapeDtypeStruct((B, D), jnp.float32),  # representation_2
    )

    return pl.pallas_call(
        kernel,
        out_shape=out_shapes,
        grid=grid,
        in_specs=[
            batch_spec, batch_spec,             # w1, w2
            wspec((D, TD)), wspec((D, TD)),     # transformation halves
            wspec((1, TD)),                     # transformation bias
            wspec((TD, 2 * D)),                 # fused combining matrix
            wspec((1, 2 * D)),                  # fused combining bias
        ],
        out_specs=[batch_spec, batch_spec, batch_spec],
        compiler_params=pltpu.CompilerParams(
            dimension_semantics=("parallel",)),
    )(w1, w2, prepared["ttop"], prepared["tbot"], prepared["tbias"],
      prepared["comb"], prepared["cbias"])


# ----------------------------------------------------------------------------
# Parameter init + pure-JAX reference (for correctness check)
# ----------------------------------------------------------------------------
def _init_params(key, input_dim, transformations):
    """Deterministic parameter init mirroring the PyTorch __init__ shapes."""
    D, T = input_dim, transformations
    k = jax.random.split(key, 6)

    def xavier_normal(rng, shape):
        rf = int(np.prod(shape[2:])) if len(shape) > 2 else 1
        fan_in = shape[1] * rf
        fan_out = shape[0] * rf
        std = float(np.sqrt(2.0 / (fan_in + fan_out)))
        return std * jax.random.normal(rng, shape, dtype=jnp.float32)

    return {
        "transformation_tensor": xavier_normal(k[0], (T, 2 * D, D)),
        "transformation_bias": jax.random.uniform(k[1], (T, D), dtype=jnp.float32),
        "combining_tensor_1": xavier_normal(k[2], (T, D, D)),
        "combining_bias_1": jax.random.uniform(k[3], (D,), dtype=jnp.float32),
        "combining_tensor_2": xavier_normal(k[4], (T, D, D)),
        "combining_bias_2": jax.random.uniform(k[5], (D,), dtype=jnp.float32),
    }


def _reference_forward(w1, w2, params, normalize_embeddings):
    """Pure-JAX reference matching the PyTorch module (eval mode)."""
    def l2n(x):
        n = jnp.sqrt(jnp.sum(x * x, axis=1, keepdims=True))
        return x / jnp.maximum(n, 1e-12)

    uv = jnp.concatenate([w1, w2], axis=1)
    t = jnp.einsum("bi,tij->btj", uv, params["transformation_tensor"])
    t = jnp.tanh(t + params["transformation_bias"])

    def compose(ct, cb):
        r = jnp.einsum("btj,tjd->bd", t, ct) + cb
        return l2n(r) if normalize_embeddings else r

    r1 = compose(params["combining_tensor_1"], params["combining_bias_1"])
    r2 = compose(params["combining_tensor_2"], params["combining_bias_2"])
    comp = r1 + r2
    if normalize_embeddings:
        comp = l2n(comp)
    return comp, r1, r2


if __name__ == "__main__":
    B, D, T = 8, 128, 4  # batch, input_dim (hidden), transformations
    NORMALIZE = True

    key = jax.random.PRNGKey(0)
    k_w1, k_w2, k_param = jax.random.split(key, 3)
    w1 = jax.random.normal(k_w1, (B, D), dtype=jnp.float32)
    w2 = jax.random.normal(k_w2, (B, D), dtype=jnp.float32)
    raw_params = _init_params(k_param, D, T)

    # One-time re-layout of the parameters (outside the per-call hot path).
    prepared = jax.tree_util.tree_map(
        lambda x: x, prepare_transweigh_params(raw_params))

    composed, rep1, rep2 = transweigh_joint_ranker_forward(
        w1, w2, prepared, normalize_embeddings=NORMALIZE)
    jax.block_until_ready((composed, rep1, rep2))

    ref_c, ref_1, ref_2 = _reference_forward(w1, w2, raw_params, NORMALIZE)
    np.testing.assert_allclose(np.asarray(composed), np.asarray(ref_c), rtol=1e-5, atol=1e-5)
    np.testing.assert_allclose(np.asarray(rep1), np.asarray(ref_1), rtol=1e-5, atol=1e-5)
    np.testing.assert_allclose(np.asarray(rep2), np.asarray(ref_2), rtol=1e-5, atol=1e-5)

    print("KERNEL_OK")
</pallas_src>

<mosaic_0001>
module attributes {stable_mosaic.version = 11 : i64} {
  func.func @_transweigh_joint_kernel(%arg0: i32, %arg1: memref<8x128xf32, #tpu.memory_space<vmem>>, %arg2: memref<8x128xf32, #tpu.memory_space<vmem>>, %arg3: memref<128x512xf32, #tpu.memory_space<vmem>>, %arg4: memref<128x512xf32, #tpu.memory_space<vmem>>, %arg5: memref<1x512xf32, #tpu.memory_space<vmem>>, %arg6: memref<512x256xf32, #tpu.memory_space<vmem>>, %arg7: memref<1x256xf32, #tpu.memory_space<vmem>>, %arg8: memref<8x128xf32, #tpu.memory_space<vmem>>, %arg9: memref<8x128xf32, #tpu.memory_space<vmem>>, %arg10: memref<8x128xf32, #tpu.memory_space<vmem>>) attributes {dimension_semantics = [#tpu.dimension_semantics<parallel>], iteration_bounds = array<i64: 1>, scalar_prefetch = 0 : i64, scratch_operands = 0 : i64, tpu.core_type = #tpu.core_type<tc>, window_params = [{transform_indices = @transform_0, window_bounds = array<i64: 8, 128>}, {transform_indices = @transform_1, window_bounds = array<i64: 8, 128>}, {pipeline_mode = #tpu.pipeline_mode<synchronous>, transform_indices = @transform_2, window_bounds = array<i64: 128, 512>}, {pipeline_mode = #tpu.pipeline_mode<synchronous>, transform_indices = @transform_3, window_bounds = array<i64: 128, 512>}, {pipeline_mode = #tpu.pipeline_mode<synchronous>, transform_indices = @transform_4, window_bounds = array<i64: 1, 512>}, {pipeline_mode = #tpu.pipeline_mode<synchronous>, transform_indices = @transform_5, window_bounds = array<i64: 512, 256>}, {pipeline_mode = #tpu.pipeline_mode<synchronous>, transform_indices = @transform_6, window_bounds = array<i64: 1, 256>}, {transform_indices = @transform_7, window_bounds = array<i64: 8, 128>}, {transform_indices = @transform_8, window_bounds = array<i64: 8, 128>}, {transform_indices = @transform_9, window_bounds = array<i64: 8, 128>}]} {
    %c0 = arith.constant 0 : index
    %c0_0 = arith.constant 0 : index
    %0 = vector.load %arg1[%c0, %c0_0] : memref<8x128xf32, #tpu.memory_space<vmem>>, vector<8x128xf32>
    %c0_1 = arith.constant 0 : index
    %c0_2 = arith.constant 0 : index
    %1 = vector.load %arg3[%c0_1, %c0_2] : memref<128x512xf32, #tpu.memory_space<vmem>>, vector<128x512xf32>
    %cst = arith.constant dense<0.000000e+00> : vector<8x512xf32>
    %2 = tpu.matmul %0, %1, %cst {dimension_numbers = #tpu.dot_dimension_numbers<[1], [0], [0], [1], [0, 0, 1, 1], [], []>} : vector<8x128xf32>, vector<128x512xf32>, vector<8x512xf32> -> vector<8x512xf32>
    %c0_3 = arith.constant 0 : index
    %c0_4 = arith.constant 0 : index
    %3 = vector.load %arg2[%c0_3, %c0_4] : memref<8x128xf32, #tpu.memory_space<vmem>>, vector<8x128xf32>
    %c0_5 = arith.constant 0 : index
    %c0_6 = arith.constant 0 : index
    %4 = vector.load %arg4[%c0_5, %c0_6] : memref<128x512xf32, #tpu.memory_space<vmem>>, vector<128x512xf32>
    %cst_7 = arith.constant dense<0.000000e+00> : vector<8x512xf32>
    %5 = tpu.matmul %3, %4, %cst_7 {dimension_numbers = #tpu.dot_dimension_numbers<[1], [0], [0], [1], [0, 0, 1, 1], [], []>} : vector<8x128xf32>, vector<128x512xf32>, vector<8x512xf32> -> vector<8x512xf32>
    %6 = arith.addf %2, %5 : vector<8x512xf32>
    %c0_8 = arith.constant 0 : index
    %c0_9 = arith.constant 0 : index
    %7 = vector.load %arg5[%c0_8, %c0_9] : memref<1x512xf32, #tpu.memory_space<vmem>>, vector<1x512xf32>
    %8 = vector.broadcast %7 : vector<1x512xf32> to vector<8x512xf32>
    %9 = arith.addf %6, %8 : vector<8x512xf32>
    %10 = math.tanh %9 : vector<8x512xf32>
    %c0_10 = arith.constant 0 : index
    %c0_11 = arith.constant 0 : index
    %11 = vector.load %arg6[%c0_10, %c0_11] : memref<512x256xf32, #tpu.memory_space<vmem>>, vector<512x256xf32>
    %cst_12 = arith.constant dense<0.000000e+00> : vector<8x256xf32>
    %12 = tpu.matmul %10, %11, %cst_12 {dimension_numbers = #tpu.dot_dimension_numbers<[1], [0], [0], [1], [0, 0, 1, 1], [], []>} : vector<8x512xf32>, vector<512x256xf32>, vector<8x256xf32> -> vector<8x256xf32>
    %c0_13 = arith.constant 0 : index
    %c0_14 = arith.constant 0 : index
    %13 = vector.load %arg7[%c0_13, %c0_14] : memref<1x256xf32, #tpu.memory_space<vmem>>, vector<1x256xf32>
    %14 = vector.broadcast %13 : vector<1x256xf32> to vector<8x256xf32>
    %15 = arith.addf %12, %14 : vector<8x256xf32>
    %16 = vector.extract_strided_slice %15 {offsets = [0, 0], sizes = [8, 128], strides = [1, 1]} : vector<8x256xf32> to vector<8x128xf32>
    %17 = vector.extract_strided_slice %15 {offsets = [0, 128], sizes = [8, 128], strides = [1, 1]} : vector<8x256xf32> to vector<8x128xf32>
    %18 = arith.mulf %16, %16 : vector<8x128xf32>
    %cst_15 = arith.constant dense<0.000000e+00> : vector<8xf32>
    %19 = vector.multi_reduction <add>, %18, %cst_15 [1] : vector<8x128xf32> to vector<8xf32>
    %20 = vector.shape_cast %19 : vector<8xf32> to vector<8x1xf32>
    %21 = math.sqrt %20 : vector<8x1xf32>
    %cst_16 = arith.constant 9.99999996E-13 : f32
    %22 = vector.broadcast %cst_16 : f32 to vector<8x1xf32>
    %23 = arith.maximumf %21, %22 : vector<8x1xf32>
    %24 = tpu.reciprocal %23 : vector<8x1xf32> -> vector<8x1xf32>
    %25 = vector.broadcast %24 : vector<8x1xf32> to vector<8x128xf32>
    %26 = arith.mulf %16, %25 : vector<8x128xf32>
    %27 = arith.mulf %17, %17 : vector<8x128xf32>
    %cst_17 = arith.constant dense<0.000000e+00> : vector<8xf32>
    %28 = vector.multi_reduction <add>, %27, %cst_17 [1] : vector<8x128xf32> to vector<8xf32>
    %29 = vector.shape_cast %28 : vector<8xf32> to vector<8x1xf32>
    %30 = math.sqrt %29 : vector<8x1xf32>
    %cst_18 = arith.constant 9.99999996E-13 : f32
    %31 = vector.broadcast %cst_18 : f32 to vector<8x1xf32>
    %32 = arith.maximumf %30, %31 : vector<8x1xf32>
    %33 = tpu.reciprocal %32 : vector<8x1xf32> -> vector<8x1xf32>
    %34 = vector.broadcast %33 : vector<8x1xf32> to vector<8x128xf32>
    %35 = arith.mulf %17, %34 : vector<8x128xf32>
    %36 = arith.addf %26, %35 : vector<8x128xf32>
    %37 = arith.mulf %36, %36 : vector<8x128xf32>
    %cst_19 = arith.constant dense<0.000000e+00> : vector<8xf32>
    %38 = vector.multi_reduction <add>, %37, %cst_19 [1] : vector<8x128xf32> to vector<8xf32>
    %39 = vector.shape_cast %38 : vector<8xf32> to vector<8x1xf32>
    %40 = math.sqrt %39 : vector<8x1xf32>
    %cst_20 = arith.constant 9.99999996E-13 : f32
    %41 = vector.broadcast %cst_20 : f32 to vector<8x1xf32>
    %42 = arith.maximumf %40, %41 : vector<8x1xf32>
    %43 = tpu.reciprocal %42 : vector<8x1xf32> -> vector<8x1xf32>
    %44 = vector.broadcast %43 : vector<8x1xf32> to vector<8x128xf32>
    %45 = arith.mulf %36, %44 : vector<8x128xf32>
    %c0_21 = arith.constant 0 : index
    %c0_22 = arith.constant 0 : index
    %46 = vector.load %arg8[%c0_21, %c0_22] : memref<8x128xf32, #tpu.memory_space<vmem>>, vector<8x128xf32>
    tpu.vector_store %arg8[%c0_21, %c0_22], %45 {strides = array<i32>} : memref<8x128xf32, #tpu.memory_space<vmem>>, vector<8x128xf32>,
    %c0_23 = arith.constant 0 : index
    %c0_24 = arith.constant 0 : index
    %47 = vector.load %arg9[%c0_23, %c0_24] : memref<8x128xf32, #tpu.memory_space<vmem>>, vector<8x128xf32>
    tpu.vector_store %arg9[%c0_23, %c0_24], %26 {strides = array<i32>} : memref<8x128xf32, #tpu.memory_space<vmem>>, vector<8x128xf32>,
    %c0_25 = arith.constant 0 : index
    %c0_26 = arith.constant 0 : index
    %48 = vector.load %arg10[%c0_25, %c0_26] : memref<8x128xf32, #tpu.memory_space<vmem>>, vector<8x128xf32>
    tpu.vector_store %arg10[%c0_25, %c0_26], %35 {strides = array<i32>} : memref<8x128xf32, #tpu.memory_space<vmem>>, vector<8x128xf32>,
    return
  }
  func.func @transform_0(%arg0: i32) -> (i32, i32) {
    %c0_i32 = arith.constant 0 : i32
    %c0_i32_0 = arith.constant 0 : i32
    return %arg0, %c0_i32 : i32, i32
  }
  func.func @transform_1(%arg0: i32) -> (i32, i32) {
    %c0_i32 = arith.constant 0 : i32
    %c0_i32_0 = arith.constant 0 : i32
    return %arg0, %c0_i32 : i32, i32
  }
  func.func @transform_2(%arg0: i32) -> (i32, i32) {
    %c0_i32 = arith.constant 0 : i32
    %c0_i32_0 = arith.constant 0 : i32
    %c0_i32_1 = arith.constant 0 : i32
    return %c0_i32, %c0_i32_0 : i32, i32
  }
  func.func @transform_3(%arg0: i32) -> (i32, i32) {
    %c0_i32 = arith.constant 0 : i32
    %c0_i32_0 = arith.constant 0 : i32
    %c0_i32_1 = arith.constant 0 : i32
    return %c0_i32, %c0_i32_0 : i32, i32
  }
  func.func @transform_4(%arg0: i32) -> (i32, i32) {
    %c0_i32 = arith.constant 0 : i32
    %c0_i32_0 = arith.constant 0 : i32
    %c0_i32_1 = arith.constant 0 : i32
    return %c0_i32, %c0_i32_0 : i32, i32
  }
  func.func @transform_5(%arg0: i32) -> (i32, i32) {
    %c0_i32 = arith.constant 0 : i32
    %c0_i32_0 = arith.constant 0 : i32
    %c0_i32_1 = arith.constant 0 : i32
    return %c0_i32, %c0_i32_0 : i32, i32
  }
  func.func @transform_6(%arg0: i32) -> (i32, i32) {
    %c0_i32 = arith.constant 0 : i32
    %c0_i32_0 = arith.constant 0 : i32
    %c0_i32_1 = arith.constant 0 : i32
    return %c0_i32, %c0_i32_0 : i32, i32
  }
  func.func @transform_7(%arg0: i32) -> (i32, i32) {
    %c0_i32 = arith.constant 0 : i32
    %c0_i32_0 = arith.constant 0 : i32
    return %arg0, %c0_i32 : i32, i32
  }
  func.func @transform_8(%arg0: i32) -> (i32, i32) {
    %c0_i32 = arith.constant 0 : i32
    %c0_i32_0 = arith.constant 0 : i32
    return %arg0, %c0_i32 : i32, i32
  }
  func.func @transform_9(%arg0: i32) -> (i32, i32) {
    %c0_i32 = arith.constant 0 : i32
    %c0_i32_0 = arith.constant 0 : i32
    return %arg0, %c0_i32 : i32, i32
  }
}

</mosaic_0001>

<bundles_post_ra>
// kernel: tpu_custom_call.1
= control target key start
LH: loop header
LB: loop body
LE: loop exit
PB: predicated region body
PF: predicated region fallthrough
CT: control target
= control target key end

     0   :  { %15 = vsyncpa [#allocation3], 0  ;;  %s1566_s0 = inlined_call_operand.hbm [shape: f32[8,128], index: 0, kind: input, shape index: {}]   ;;  %s1567_s1 = inlined_call_operand.hbm [shape: f32[8,128], index: 1, kind: input, shape index: {}]   ;;  %s1568_s2 = inlined_call_operand.hbm [shape: f32[128,512], index: 2, kind: input, shape index: {}]   ;;  %s1569_s3 = inlined_call_operand.hbm [shape: f32[128,512], index: 3, kind: input, shape index: {}]   ;;  %s1570_s4 = inlined_call_operand.vmem [shape: f32[1,512], index: 4, kind: input, shape index: {}]   ;;  %s1571_s5 = inlined_call_operand.hbm [shape: f32[512,256], index: 5, kind: input, shape index: {}]   ;;  %s1572_s6 = inlined_call_operand.vmem [shape: f32[1,256], index: 6, kind: input, shape index: {}]   ;;  %s1573_s7 = inlined_call_operand.hbm [shape: f32[8,128], index: 7, kind: output, shape index: {0}]   ;;  %s1574_s8 = inlined_call_operand.hbm [shape: f32[8,128], index: 8, kind: output, shape index: {1}]   ;;  %s1575_s9 = inlined_call_operand.hbm [shape: f32[8,128], index: 9, kind: output, shape index: {2}]  }
   0x1   :  { %16 = vsyncpa [#allocation6], 0 }
   0x2   :  { %17 = vsyncpa [#allocation9], 0 }
   0x3   :  { %18 = vsyncpa [#allocation4], 0 }
   0x4   :  { %19 = vsyncpa [#allocation13], 0  ;;  %s1391_s30 = smov [#allocation5]   ;;  %s1205_s13 = scalar_lea.hbm %s1567_s1, 128 }
   0x5   :  { %s36_s10 = sshll.u32 %s1391_s30, 4  ;;  %p1206_p0 = scmp.ne.s32.totalorder %s1567_s1, %s1205_s13  ;;  %s37_s10 = int_to_ptr.vmem [resolvable:$true] %s36_s10 }
   0x6   :  { %p1209_p1 = scmp.lt.u32.totalorder %s1205_s13, %s1567_s1 }
   0x8   :  { %p1211_p2 = pnand %p1209_p1, %p1206_p0 }
   0xa   :  { %1214 = shalt.err (!%p1211_p2)
}
   0xb   :  { %s1215_s18 = scalar_lea.vmem %s37_s10, 128  ;;  %p1220_p4 = scmp.lt.s32.totalorder %s37_s10, %s37_s10 }
   0xc   :  { %p1216_p3 = scmp.ne.s32.totalorder %s37_s10, %s1215_s18  ;;  %p1221_p5 = scmp.lt.s32.totalorder %s1215_s18, %s1215_s18 }
   0xe   :  { %p1222_p6 = por %p1221_p5, %p1220_p4 }
  0x10   :  { %p1223_p7 = pnand %p1222_p6, %p1216_p3 }
  0x12   :  { %1226 = shalt.err (!%p1223_p7)
}
  0x13   :  { %39 = dma.hbm_to_vmem [thread:$0]  %s1567_s1, 128, %s37_s10, [#allocation6]  }
  0x14   :  { %s1392_s21 = smov [#allocation8]   ;;  %s1393_s23 = smov [#allocation2]  }
  0x15   :  { %s57_s22 = sshll.u32 %s1392_s21, 4  ;;  %s26_s24 = sshll.u32 %s1393_s23, 4  ;;  %s58_s22 = int_to_ptr.vmem [resolvable:$true] %s57_s22  ;;  %s27_s24 = int_to_ptr.vmem [resolvable:$true] %s26_s24 }
  0x16   :  { %s1227_s27 = scalar_lea.hbm %s1569_s3, 8192 }
  0x17   :  { %p1228_p8 = scmp.ne.s32.totalorder %s1569_s3, %s1227_s27  ;;  %p1231_p9 = scmp.lt.u32.totalorder %s1227_s27, %s1569_s3 }
  0x19   :  { %p1233_p10 = pnand %p1231_p9, %p1228_p8 }
  0x1b   :  { %1236 = shalt.err (!%p1233_p10)
}
  0x1c   :  { %s1237_s1 = scalar_lea.vmem %s58_s22, 8192  ;;  %p1242_p12 = scmp.lt.s32.totalorder %s58_s22, %s58_s22 }
  0x1d   :  { %p1238_p11 = scmp.ne.s32.totalorder %s58_s22, %s1237_s1  ;;  %p1243_p13 = scmp.lt.s32.totalorder %s1237_s1, %s1237_s1 }
  0x1f   :  { %p1244_p0 = por %p1243_p13, %p1242_p12 }
  0x21   :  { %p1245_p1 = pnand %p1244_p0, %p1238_p11 }
  0x23   :  { %1248 = shalt.err (!%p1245_p1)
}
  0x24   :  { %s1394_s10 = smov 512   ;;  %s1395_s12 = smov 32  }
  0x25   :  { %63 = dma.hbm_to_vmem [thread:$0]  %s1569_s3, 8192, %s58_s22, [#allocation9], %s1394_s10, %s1394_s10, %s1395_s12  }
  0x26   :  { %s1249_s17 = scalar_lea.hbm %s1566_s0, 128 }
  0x27   :  { %p1250_p2 = scmp.ne.s32.totalorder %s1566_s0, %s1249_s17  ;;  %p1253_p3 = scmp.lt.u32.totalorder %s1249_s17, %s1566_s0 }
  0x29   :  { %p1255_p4 = pnand %p1253_p3, %p1250_p2 }
  0x2b   :  { %1258 = shalt.err (!%p1255_p4)
}
  0x2c   :  { %s1259_s23 = scalar_lea.vmem %s27_s24, 128  ;;  %p1264_p6 = scmp.lt.s32.totalorder %s27_s24, %s27_s24 }
  0x2d   :  { %p1260_p5 = scmp.ne.s32.totalorder %s27_s24, %s1259_s23  ;;  %p1265_p7 = scmp.lt.s32.totalorder %s1259_s23, %s1259_s23 }
  0x2f   :  { %p1266_p8 = por %p1265_p7, %p1264_p6 }
  0x31   :  { %p1267_p9 = pnand %p1266_p8, %p1260_p5 }
  0x33   :  { %1270 = shalt.err (!%p1267_p9)
}
  0x34   :  { %29 = dma.hbm_to_vmem [thread:$0]  %s1566_s0, 128, %s27_s24, [#allocation3]  }
  0x35   :  { %s1396_s25 = smov [#allocation7]   ;;  %s1397_s27 = smov [#allocation10]  }
  0x36   :  { %s45_s26 = sshll.u32 %s1396_s25, 4  ;;  %s71_s28 = sshll.u32 %s1397_s27, 4  ;;  %s46_s26 = int_to_ptr.vmem [resolvable:$true] %s45_s26  ;;  %s72_s28 = int_to_ptr.vmem [resolvable:$true] %s71_s28 }
  0x37   :  { %s1271_s11 = scalar_lea.hbm %s1568_s2, 8192 }
  0x38   :  { %p1272_p10 = scmp.ne.s32.totalorder %s1568_s2, %s1271_s11  ;;  %p1275_p11 = scmp.lt.u32.totalorder %s1271_s11, %s1568_s2 }
  0x3a   :  { %p1277_p12 = pnand %p1275_p11, %p1272_p10 }
  0x3c   :  { %1280 = shalt.err (!%p1277_p12)
}
  0x3d   :  { %s1281_s0 = scalar_lea.vmem %s46_s26, 8192  ;;  %p1286_p0 = scmp.lt.s32.totalorder %s46_s26, %s46_s26 }
  0x3e   :  { %p1282_p13 = scmp.ne.s32.totalorder %s46_s26, %s1281_s0  ;;  %p1287_p1 = scmp.lt.s32.totalorder %s1281_s0, %s1281_s0 }
  0x40   :  { %p1288_p2 = por %p1287_p1, %p1286_p0 }
  0x42   :  { %p1289_p3 = pnand %p1288_p2, %p1282_p13 }
  0x44   :  { %1292 = shalt.err (!%p1289_p3)
}
  0x45   :  { %51 = dma.hbm_to_vmem [thread:$0]  %s1568_s2, 8192, %s46_s26, [#allocation6], %s1394_s10, %s1394_s10, %s1395_s12  }
  0x46   :  { %s1293_s19 = scalar_lea.hbm %s1571_s5, 16384 }
  0x47   :  { %p1294_p4 = scmp.ne.s32.totalorder %s1571_s5, %s1293_s19  ;;  %p1297_p5 = scmp.lt.u32.totalorder %s1293_s19, %s1571_s5 }
  0x49   :  { %p1299_p6 = pnand %p1297_p5, %p1294_p4 }
  0x4b   :  { %1302 = shalt.err (!%p1299_p6)
}
  0x4c   :  { %s1303_s22 = scalar_lea.vmem %s72_s28, 16384  ;;  %p1308_p8 = scmp.lt.s32.totalorder %s72_s28, %s72_s28 }
  0x4d   :  { %p1304_p7 = scmp.ne.s32.totalorder %s72_s28, %s1303_s22  ;;  %p1309_p9 = scmp.lt.s32.totalorder %s1303_s22, %s1303_s22 }
  0x4f   :  { %p1310_p10 = por %p1309_p9, %p1308_p8 }
  0x51   :  { %p1311_p11 = pnand %p1310_p10, %p1304_p7 }
  0x53   :  { %1314 = shalt.err (!%p1311_p11)
}
  0x54   :  { %s1398_s2 = smov 256   ;;  %s1399_s10 = smov 16  }
  0x55   :  { %77 = dma.hbm_to_vmem [thread:$0]  %s1571_s5, 16384, %s72_s28, [#allocation9], %s1398_s2, %s1398_s2, %s1399_s10  }
  0x56   :  { %1381 = dma.done.wait [#allocation3], 128  }
  0x57   :  { %1382 = vsyncadd [#allocation3], 4294967168 }
  0x58   :  { %1383 = dma.done.wait [#allocation6], 8320  }
  0x59   :  { %1384 = vsyncadd [#allocation6], 4294958976 }
  0x5a   :  { %1385 = dma.done.wait [#allocation9], 24576  }
  0x5b   :  { %1386 = vsyncadd [#allocation9], 4294942720  ;;  %v1400_v0 = vmov 0.0   ;;  %v162_v1 = vld [vmem:[#allocation8 + $0x8] sm:$0xff]  ;;  %v164_v3 = vld [vmem:[#allocation8 + $0x18] sm:$0xff] }
  0x5c   :  { %289 = vmatprep.mubr.f32.mxu0 %v1400_v0  ;;  %360 = vmatprep.mubr.f32.mxu1 %v1400_v0  ;;  %v166_v2 = vld [vmem:[#allocation8 + $0x28] sm:$0xff]  ;;  %v168_v5 = vld [vmem:[#allocation8 + $0x38] sm:$0xff]  ;;  %v161_v6 = vld [vmem:[#allocation8] sm:$0xff] }
  0x5d   :  { %v908_v4 = vpack.c.bf16 %v166_v2, %v162_v1  ;;  %v165_v7 = vld [vmem:[#allocation8 + $0x20] sm:$0xff]  ;;  %v940_v8 = vpack.c.bf16 %v168_v5, %v164_v3  ;;  %v163_v10 = vld [vmem:[#allocation8 + $0x10] sm:$0xff]  ;;  %v170_v12 = vld [vmem:[#allocation8 + $0x48] sm:$0xff] }
  0x5e   :  { %v910_v9 = vpack.c.bf16 %v165_v7, %v161_v6  ;;  %v167_v11 = vld [vmem:[#allocation8 + $0x30] sm:$0xff]  ;;  %v174_v14 = vld [vmem:[#allocation8 + $0x68] sm:$0xff]  ;;  %v172_v15 = vld [vmem:[#allocation8 + $0x58] sm:$0xff] }
  0x5f   :  { %909 = vmatprep.subr.bf16.mxu0 %v908_v4  ;;  %v942_v13 = vpack.c.bf16 %v167_v11, %v163_v10  ;;  %v176_v16 = vld [vmem:[#allocation8 + $0x78] sm:$0xff]  ;;  %941 = vmatprep.subr.bf16.mxu1 %v940_v8  ;;  %v912_v17 = vpack.c.bf16 %v174_v14, %v170_v12  ;;  %v169_v19 = vld [vmem:[#allocation8 + $0x40] sm:$0xff]  ;;  %v171_v21 = vld [vmem:[#allocation8 + $0x50] sm:$0xff] }
  0x60   :  { %911 = vmatpush1.bf16.msra.mxu0 %v910_v9  ;;  %v944_v18 = vpack.c.bf16 %v176_v16, %v172_v15  ;;  %v173_v20 = vld [vmem:[#allocation8 + $0x60] sm:$0xff]  ;;  %v175_v23 = vld [vmem:[#allocation8 + $0x70] sm:$0xff]  ;;  %v178_v24 = vld [vmem:[#allocation8 + $0x88] sm:$0xff] }
  0x61   :  { %943 = vmatpush1.bf16.msra.mxu1 %v942_v13  ;;  %v914_v22 = vpack.c.bf16 %v173_v20, %v169_v19  ;;  %v182_v25 = vld [vmem:[#allocation8 + $0xa8] sm:$0xff]  ;;  %913 = vmatprep.subr.bf16.mxu0 %v912_v17  ;;  %v946_v26 = vpack.c.bf16 %v175_v23, %v171_v21  ;;  %v180_v28 = vld [vmem:[#allocation8 + $0x98] sm:$0xff]  ;;  %v177_v30 = vld [vmem:[#allocation8 + $0x80] sm:$0xff] }
  0x62   :  { %945 = vmatprep.subr.bf16.mxu1 %v944_v18  ;;  %v916_v27 = vpack.c.bf16 %v182_v25, %v178_v24  ;;  %v184_v29 = vld [vmem:[#allocation8 + $0xb8] sm:$0xff]  ;;  %v181_v32 = vld [vmem:[#allocation8 + $0xa0] sm:$0xff]  ;;  %v179_v33 = vld [vmem:[#allocation8 + $0x90] sm:$0xff] }
  0x63   :  { %v948_v31 = vpack.c.bf16 %v184_v29, %v180_v28  ;;  %v183_v34 = vld [vmem:[#allocation8 + $0xb0] sm:$0xff]  ;;  %v918_v35 = vpack.c.bf16 %v181_v32, %v177_v30  ;;  %v186_v36 = vld [vmem:[#allocation8 + $0xc8] sm:$0xff]  ;;  %v188_v38 = vld [vmem:[#allocation8 + $0xd8] sm:$0xff] }
  0x64   :  { %915 = vmatpush1.bf16.msra.mxu0 %v914_v22  ;;  %v190_v37 = vld [vmem:[#allocation8 + $0xe8] sm:$0xff]  ;;  %v950_v39 = vpack.c.bf16 %v183_v34, %v179_v33  ;;  %v192_v41 = vld [vmem:[#allocation8 + $0xf8] sm:$0xff]  ;;  %v185_v42 = vld [vmem:[#allocation8 + $0xc0] sm:$0xff] }
  0x65   :  { %947 = vmatpush1.bf16.msra.mxu1 %v946_v26  ;;  %917 = vmatprep.subr.bf16.mxu0 %v916_v27  ;;  %v920_v40 = vpack.c.bf16 %v190_v37, %v186_v36  ;;  %v189_v43 = vld [vmem:[#allocation8 + $0xe0] sm:$0xff]  ;;  %v952_v44 = vpack.c.bf16 %v192_v41, %v188_v38  ;;  %v187_v45 = vld [vmem:[#allocation8 + $0xd0] sm:$0xff]  ;;  %v194_v47 = vld [vmem:[#allocation8 + $0x108] sm:$0xff] }
  0x66   :  { %949 = vmatprep.subr.bf16.mxu1 %v948_v31  ;;  %v191_v46 = vld [vmem:[#allocation8 + $0xf0] sm:$0xff]  ;;  %v198_v48 = vld [vmem:[#allocation8 + $0x128] sm:$0xff]  ;;  %v196_v49 = vld [vmem:[#allocation8 + $0x118] sm:$0xff]  ;;  %v922_v51 = vpack.c.bf16 %v189_v43, %v185_v42 }
  0x67   :  { %v200_v50 = vld [vmem:[#allocation8 + $0x138] sm:$0xff]  ;;  %v954_v52 = vpack.c.bf16 %v191_v46, %v187_v45  ;;  %v924_v53 = vpack.c.bf16 %v198_v48, %v194_v47  ;;  %v193_v54 = vld [vmem:[#allocation8 + $0x100] sm:$0xff]  ;;  %v195_v56 = vld [vmem:[#allocation8 + $0x110] sm:$0xff] }
  0x68   :  { %919 = vmatpush1.bf16.msra.mxu0 %v918_v35  ;;  %v197_v55 = vld [vmem:[#allocation8 + $0x120] sm:$0xff]  ;;  %v956_v57 = vpack.c.bf16 %v200_v50, %v196_v49  ;;  %v199_v58 = vld [vmem:[#allocation8 + $0x130] sm:$0xff]  ;;  %v202_v59 = vld [vmem:[#allocation8 + $0x148] sm:$0xff] }
  0x69   :  { %951 = vmatpush1.bf16.msra.mxu1 %v950_v39  ;;  %921 = vmatprep.subr.bf16.mxu0 %v920_v40  ;;  %v206_v60 = vld [vmem:[#allocation8 + $0x168] sm:$0xff]  ;;  %v204_v61 = vld [vmem:[#allocation8 + $0x158] sm:$0xff]  ;;  %v926_v63 = vpack.c.bf16 %v197_v55, %v193_v54  ;;  %v958_v1 = vpack.c.bf16 %v199_v58, %v195_v56  ;;  %v201_v3 = vld [vmem:[#allocation8 + $0x140] sm:$0xff] }
  0x6a   :  { %953 = vmatprep.subr.bf16.mxu1 %v952_v44  ;;  %v208_v62 = vld [vmem:[#allocation8 + $0x178] sm:$0xff]  ;;  %v928_v2 = vpack.c.bf16 %v206_v60, %v202_v59  ;;  %v205_v4 = vld [vmem:[#allocation8 + $0x160] sm:$0xff]  ;;  %v203_v5 = vld [vmem:[#allocation8 + $0x150] sm:$0xff] }
  0x6b   :  { %v960_v6 = vpack.c.bf16 %v208_v62, %v204_v61  ;;  %v207_v7 = vld [vmem:[#allocation8 + $0x170] sm:$0xff]  ;;  %v210_v8 = vld [vmem:[#allocation8 + $0x188] sm:$0xff]  ;;  %v212_v10 = vld [vmem:[#allocation8 + $0x198] sm:$0xff]  ;;  %v930_v12 = vpack.c.bf16 %v205_v4, %v201_v3 }
  0x6c   :  { %923 = vmatpush1.bf16.msra.mxu0 %v922_v51  ;;  %v214_v9 = vld [vmem:[#allocation8 + $0x1a8] sm:$0xff]  ;;  %v216_v11 = vld [vmem:[#allocation8 + $0x1b8] sm:$0xff]  ;;  %v962_v13 = vpack.c.bf16 %v207_v7, %v203_v5  ;;  %v209_v15 = vld [vmem:[#allocation8 + $0x180] sm:$0xff] }
  0x6d   :  { %955 = vmatpush1.bf16.msra.mxu1 %v954_v52  ;;  %925 = vmatprep.subr.bf16.mxu0 %v924_v53  ;;  %v932_v14 = vpack.c.bf16 %v214_v9, %v210_v8  ;;  %v213_v16 = vld [vmem:[#allocation8 + $0x1a0] sm:$0xff]  ;;  %v211_v17 = vld [vmem:[#allocation8 + $0x190] sm:$0xff]  ;;  %v964_v18 = vpack.c.bf16 %v216_v11, %v212_v10  ;;  %v218_v20 = vld [vmem:[#allocation8 + $0x1c8] sm:$0xff] }
  0x6e   :  { %957 = vmatprep.subr.bf16.mxu1 %v956_v57  ;;  %v215_v19 = vld [vmem:[#allocation8 + $0x1b0] sm:$0xff]  ;;  %v222_v21 = vld [vmem:[#allocation8 + $0x1e8] sm:$0xff]  ;;  %v220_v22 = vld [vmem:[#allocation8 + $0x1d8] sm:$0xff]  ;;  %v934_v24 = vpack.c.bf16 %v213_v16, %v209_v15 }
  0x6f   :  { %v224_v23 = vld [vmem:[#allocation8 + $0x1f8] sm:$0xff]  ;;  %v966_v25 = vpack.c.bf16 %v215_v19, %v211_v17  ;;  %v936_v26 = vpack.c.bf16 %v222_v21, %v218_v20  ;;  %v217_v27 = vld [vmem:[#allocation8 + $0x1c0] sm:$0xff]  ;;  %v219_v29 = vld [vmem:[#allocation8 + $0x1d0] sm:$0xff] }
  0x70   :  { %927 = vmatpush1.bf16.msra.mxu0 %v926_v63  ;;  %v221_v28 = vld [vmem:[#allocation8 + $0x1e0] sm:$0xff]  ;;  %v968_v30 = vpack.c.bf16 %v224_v23, %v220_v22  ;;  %v223_v31 = vld [vmem:[#allocation8 + $0x1f0] sm:$0xff]  ;;  %v97_v32 = vld [vmem:[#allocation7 + $0x8] sm:$0xff] }
  0x71   :  { %959 = vmatpush1.bf16.msra.mxu1 %v958_v1  ;;  %929 = vmatprep.subr.bf16.mxu0 %v928_v2  ;;  %v101_v33 = vld [vmem:[#allocation7 + $0x28] sm:$0xff]  ;;  %v99_v34 = vld [vmem:[#allocation7 + $0x18] sm:$0xff]  ;;  %v938_v36 = vpack.c.bf16 %v221_v28, %v217_v27  ;;  %v970_v37 = vpack.c.bf16 %v223_v31, %v219_v29  ;;  %v96_v39 = vld [vmem:[#allocation7] sm:$0xff] }
  0x72   :  { %961 = vmatprep.subr.bf16.mxu1 %v960_v6  ;;  %v103_v35 = vld [vmem:[#allocation7 + $0x38] sm:$0xff]  ;;  %v972_v38 = vpack.c.bf16 %v101_v33, %v97_v32  ;;  %v100_v40 = vld [vmem:[#allocation7 + $0x20] sm:$0xff]  ;;  %v98_v41 = vld [vmem:[#allocation7 + $0x10] sm:$0xff] }
  0x73   :  { %v1004_v42 = vpack.c.bf16 %v103_v35, %v99_v34  ;;  %v102_v43 = vld [vmem:[#allocation7 + $0x30] sm:$0xff]  ;;  %v105_v44 = vld [vmem:[#allocation7 + $0x48] sm:$0xff]  ;;  %v107_v46 = vld [vmem:[#allocation7 + $0x58] sm:$0xff]  ;;  %v974_v49 = vpack.c.bf16 %v100_v40, %v96_v39 }
  0x74   :  { %931 = vmatpush1.bf16.msra.mxu0 %v930_v12  ;;  %v109_v45 = vld [vmem:[#allocation7 + $0x68] sm:$0xff]  ;;  %v111_v47 = vld [vmem:[#allocation7 + $0x78] sm:$0xff]  ;;  %v1006_v50 = vpack.c.bf16 %v102_v43, %v98_v41  ;;  %v104_v52 = vld [vmem:[#allocation7 + $0x40] sm:$0xff] }
  0x75   :  { %963 = vmatpush1.bf16.msra.mxu1 %v962_v13  ;;  %933 = vmatprep.subr.bf16.mxu0 %v932_v14  ;;  %v160_v48 = vld [vmem:[#allocation5] sm:$0xff]  ;;  %v976_v51 = vpack.c.bf16 %v109_v45, %v105_v44  ;;  %v108_v53 = vld [vmem:[#allocation7 + $0x60] sm:$0xff]  ;;  %v106_v54 = vld [vmem:[#allocation7 + $0x50] sm:$0xff]  ;;  %v1008_v55 = vpack.c.bf16 %v111_v47, %v107_v46 }
  0x76   :  { %965 = vmatprep.subr.bf16.mxu1 %v964_v18  ;;  %v110_v56 = vld [vmem:[#allocation7 + $0x70] sm:$0xff]  ;;  %v113_v57 = vld [vmem:[#allocation7 + $0x88] sm:$0xff]  ;;  %v115_v59 = vld [vmem:[#allocation7 + $0x98] sm:$0xff]  ;;  %v978_v61 = vpack.c.bf16 %v108_v53, %v104_v52 }
  0x77   :  { %v117_v58 = vld [vmem:[#allocation7 + $0xa8] sm:$0xff]  ;;  %v119_v60 = vld [vmem:[#allocation7 + $0xb8] sm:$0xff]  ;;  %v1010_v62 = vpack.c.bf16 %v110_v56, %v106_v54  ;;  %v112_v1 = vld [vmem:[#allocation7 + $0x80] sm:$0xff] }
  0x78   :  { %935 = vmatpush1.bf16.msra.mxu0 %v934_v24  ;;  %v980_v63 = vpack.c.bf16 %v117_v58, %v113_v57  ;;  %v116_v2 = vld [vmem:[#allocation7 + $0xa0] sm:$0xff]  ;;  %v114_v3 = vld [vmem:[#allocation7 + $0x90] sm:$0xff]  ;;  %v1012_v4 = vpack.c.bf16 %v119_v60, %v115_v59  ;;  %v121_v6 = vld [vmem:[#allocation7 + $0xc8] sm:$0xff] }
  0x79   :  { %967 = vmatpush1.bf16.msra.mxu1 %v966_v25  ;;  %937 = vmatprep.subr.bf16.mxu0 %v936_v26  ;;  %v118_v5 = vld [vmem:[#allocation7 + $0xb0] sm:$0xff]  ;;  %v125_v7 = vld [vmem:[#allocation7 + $0xe8] sm:$0xff]  ;;  %v123_v8 = vld [vmem:[#allocation7 + $0xd8] sm:$0xff]  ;;  %v982_v10 = vpack.c.bf16 %v116_v2, %v112_v1 }
  0x7a   :  { %969 = vmatprep.subr.bf16.mxu1 %v968_v30  ;;  %v127_v9 = vld [vmem:[#allocation7 + $0xf8] sm:$0xff]  ;;  %v1014_v11 = vpack.c.bf16 %v118_v5, %v114_v3  ;;  %v984_v12 = vpack.c.bf16 %v125_v7, %v121_v6  ;;  %v120_v13 = vld [vmem:[#allocation7 + $0xc0] sm:$0xff]  ;;  %v122_v15 = vld [vmem:[#allocation7 + $0xd0] sm:$0xff] }
  0x7b   :  { %v124_v14 = vld [vmem:[#allocation7 + $0xe0] sm:$0xff]  ;;  %v1016_v16 = vpack.c.bf16 %v127_v9, %v123_v8  ;;  %v126_v17 = vld [vmem:[#allocation7 + $0xf0] sm:$0xff]  ;;  %v129_v18 = vld [vmem:[#allocation7 + $0x108] sm:$0xff] }
  0x7c   :  { %939 = vmatpush1.bf16.msra.mxu0 %v938_v36  ;;  %v133_v19 = vld [vmem:[#allocation7 + $0x128] sm:$0xff]  ;;  %v131_v20 = vld [vmem:[#allocation7 + $0x118] sm:$0xff]  ;;  %v986_v22 = vpack.c.bf16 %v124_v14, %v120_v13  ;;  %v128_v24 = vld [vmem:[#allocation7 + $0x100] sm:$0xff] }
  0x7d   :  { %971 = vmatpush1.bf16.msra.mxu1 %v970_v37  ;;  %973 = vmatprep.subr.bf16.mxu0 %v972_v38  ;;  %v135_v21 = vld [vmem:[#allocation7 + $0x138] sm:$0xff]  ;;  %v988_v23 = vpack.c.bf16 %v133_v19, %v129_v18  ;;  %v132_v25 = vld [vmem:[#allocation7 + $0x120] sm:$0xff]  ;;  %v130_v26 = vld [vmem:[#allocation7 + $0x110] sm:$0xff] }
  0x7e   :  { %1005 = vmatprep.subr.bf16.mxu1 %v1004_v42  ;;  %v1020_v27 = vpack.c.bf16 %v135_v21, %v131_v20  ;;  %v134_v28 = vld [vmem:[#allocation7 + $0x130] sm:$0xff]  ;;  %v137_v29 = vld [vmem:[#allocation7 + $0x148] sm:$0xff]  ;;  %v139_v31 = vld [vmem:[#allocation7 + $0x158] sm:$0xff]  ;;  %v990_v33 = vpack.c.bf16 %v132_v25, %v128_v24 }
  0x7f   :  { %290 = vmatmul.mubr.f32.vlgmr.msra.gmra.mrb[0].mxu0 %v160_v48  ;;  %v141_v30 = vld [vmem:[#allocation7 + $0x168] sm:$0xff]  ;;  %v143_v32 = vld [vmem:[#allocation7 + $0x178] sm:$0xff]  ;;  %v1022_v34 = vpack.c.bf16 %v134_v28, %v130_v26  ;;  %v136_v36 = vld [vmem:[#allocation7 + $0x140] sm:$0xff] }
  0x80   :  { %361 = vmatmul.mubr.f32.vlgmr.msra.gmra.mrb[0].mxu1 %v160_v48  ;;  %975 = vmatpush1.bf16.msra.mxu0 %v974_v49  ;;  %v992_v35 = vpack.c.bf16 %v141_v30, %v137_v29  ;;  %v140_v37 = vld [vmem:[#allocation7 + $0x160] sm:$0xff]  ;;  %v138_v38 = vld [vmem:[#allocation7 + $0x150] sm:$0xff]  ;;  %v1024_v39 = vpack.c.bf16 %v143_v32, %v139_v31  ;;  %v145_v41 = vld [vmem:[#allocation7 + $0x188] sm:$0xff] }
  0x81   :  { %1007 = vmatpush1.bf16.msra.mxu1 %v1006_v50  ;;  %977 = vmatprep.subr.bf16.mxu0 %v976_v51  ;;  %v142_v40 = vld [vmem:[#allocation7 + $0x170] sm:$0xff]  ;;  %v149_v42 = vld [vmem:[#allocation7 + $0x1a8] sm:$0xff]  ;;  %v147_v43 = vld [vmem:[#allocation7 + $0x198] sm:$0xff]  ;;  %v994_v45 = vpack.c.bf16 %v140_v37, %v136_v36 }
  0x82   :  { %1009 = vmatprep.subr.bf16.mxu1 %v1008_v55  ;;  %431 = vmatprep.mubr.f32.mxu0 %v1400_v0  ;;  %v151_v44 = vld [vmem:[#allocation7 + $0x1b8] sm:$0xff]  ;;  %v1026_v46 = vpack.c.bf16 %v142_v40, %v138_v38  ;;  %v996_v47 = vpack.c.bf16 %v149_v42, %v145_v41  ;;  %v144_v48 = vld [vmem:[#allocation7 + $0x180] sm:$0xff]  ;;  %v146_v50 = vld [vmem:[#allocation7 + $0x190] sm:$0xff] }
  0x83   :  { %502 = vmatprep.mubr.f32.mxu1 %v1400_v0  ;;  %v1018_v0 = vpack.c.bf16 %v126_v17, %v122_v15  ;;  %v148_v49 = vld [vmem:[#allocation7 + $0x1a0] sm:$0xff]  ;;  %v1028_v51 = vpack.c.bf16 %v151_v44, %v147_v43  ;;  %v150_v52 = vld [vmem:[#allocation7 + $0x1b0] sm:$0xff]  ;;  %v153_v53 = vld [vmem:[#allocation7 + $0x1c8] sm:$0xff] }
  0x84   :  { %979 = vmatpush1.bf16.msra.mxu0 %v978_v61  ;;  %v157_v54 = vld [vmem:[#allocation7 + $0x1e8] sm:$0xff]  ;;  %v155_v55 = vld [vmem:[#allocation7 + $0x1d8] sm:$0xff]  ;;  %v998_v57 = vpack.c.bf16 %v148_v49, %v144_v48  ;;  %v1030_v58 = vpack.c.bf16 %v150_v52, %v146_v50  ;;  %v152_v60 = vld [vmem:[#allocation7 + $0x1c0] sm:$0xff] }
  0x85   :  { %1011 = vmatpush1.bf16.msra.mxu1 %v1010_v62  ;;  %981 = vmatprep.subr.bf16.mxu0 %v980_v63  ;;  %v159_v56 = vld [vmem:[#allocation7 + $0x1f8] sm:$0xff]  ;;  %v1000_v59 = vpack.c.bf16 %v157_v54, %v153_v53  ;;  %v156_v61 = vld [vmem:[#allocation7 + $0x1e0] sm:$0xff]  ;;  %v154_v62 = vld [vmem:[#allocation7 + $0x1d0] sm:$0xff] }
  0x86   :  { %1013 = vmatprep.subr.bf16.mxu1 %v1012_v4  ;;  %v1032_v63 = vpack.c.bf16 %v159_v56, %v155_v55  ;;  %v158_v1 = vld [vmem:[#allocation7 + $0x1f0] sm:$0xff]  ;;  %v604_v2 = vld [vmem:[#allocation10 + $0x208] sm:$0xff]  ;;  %v606_v3 = vld [vmem:[#allocation10 + $0x218] sm:$0xff]  ;;  %v1002_v6 = vpack.c.bf16 %v156_v61, %v152_v60 }
  0x87   :  { %v540_v4 = vld [vmem:[#allocation10 + $0x8] sm:$0xff]  ;;  %v542_v5 = vld [vmem:[#allocation10 + $0x18] sm:$0xff]  ;;  %v1034_v7 = vpack.c.bf16 %v158_v1, %v154_v62  ;;  %v1100_v8 = vpack.c.bf16 %v606_v3, %v604_v2  ;;  %v539_v9 = vld [vmem:[#allocation10] sm:$0xff] }
  0x88   :  { %983 = vmatpush1.bf16.msra.mxu0 %v982_v10  ;;  %v603_v10 = vld [vmem:[#allocation10 + $0x200] sm:$0xff]  ;;  %v541_v13 = vld [vmem:[#allocation10 + $0x10] sm:$0xff]  ;;  %v608_v14 = vld [vmem:[#allocation10 + $0x228] sm:$0xff] }
  0x89   :  { %1015 = vmatpush1.bf16.msra.mxu1 %v1014_v11  ;;  %985 = vmatprep.subr.bf16.mxu0 %v984_v12  ;;  %v605_v11 = vld [vmem:[#allocation10 + $0x210] sm:$0xff]  ;;  %v1036_v12 = vpack.c.bf16 %v542_v5, %v540_v4  ;;  %v610_v15 = vld [vmem:[#allocation10 + $0x238] sm:$0xff]  ;;  %v1038_v20 = vpack.c.bf16 %v541_v13, %v539_v9  ;;  %v612_v26 = vld [vmem:[#allocation10 + $0x248] sm:$0xff] }
  0x8a   :  { %1017 = vmatprep.subr.bf16.mxu1 %v1016_v16  ;;  %v544_v16 = vld [vmem:[#allocation10 + $0x28] sm:$0xff]  ;;  %v546_v17 = vld [vmem:[#allocation10 + $0x38] sm:$0xff]  ;;  %v95_v18 = vld [vmem:[#allocation2] sm:$0xff]  ;;  %v1102_v19 = vpack.c.bf16 %v605_v11, %v603_v10  ;;  %v1104_v21 = vpack.c.bf16 %v610_v15, %v608_v14 }
  0x8b   :  { %v1040_v24 = vpack.c.bf16 %v546_v17, %v544_v16  ;;  %v545_v25 = vld [vmem:[#allocation10 + $0x30] sm:$0xff]  ;;  %v548_v28 = vld [vmem:[#allocation10 + $0x48] sm:$0xff]  ;;  %v550_v29 = vld [vmem:[#allocation10 + $0x58] sm:$0xff] }
  0x8c   :  { %987 = vmatpush1.bf16.msra.mxu0 %v986_v22  ;;  %v543_v22 = vld [vmem:[#allocation10 + $0x20] sm:$0xff]  ;;  %v1044_v36 = vpack.c.bf16 %v550_v29, %v548_v28  ;;  %v549_v37 = vld [vmem:[#allocation10 + $0x50] sm:$0xff]  ;;  %v616_v38 = vld [vmem:[#allocation10 + $0x268] sm:$0xff] }
  0x8d   :  { %1019 = vmatpush1.bf16.msra.mxu1 %v1018_v0  ;;  %989 = vmatprep.subr.bf16.mxu0 %v988_v23  ;;  %v607_v0 = vld [vmem:[#allocation10 + $0x220] sm:$0xff]  ;;  %v609_v23 = vld [vmem:[#allocation10 + $0x230] sm:$0xff]  ;;  %v1042_v31 = vpack.c.bf16 %v545_v25, %v543_v22  ;;  %v552_v40 = vld [vmem:[#allocation10 + $0x68] sm:$0xff] }
  0x8e   :  { %1021 = vmatprep.subr.bf16.mxu1 %v1020_v27  ;;  %v614_v27 = vld [vmem:[#allocation10 + $0x258] sm:$0xff]  ;;  %v1106_v30 = vpack.c.bf16 %v609_v23, %v607_v0  ;;  %v553_v49 = vld [vmem:[#allocation10 + $0x70] sm:$0xff]  ;;  %v620_v50 = vld [vmem:[#allocation10 + $0x288] sm:$0xff] }
  0x8f   :  { %v1108_v32 = vpack.c.bf16 %v614_v27, %v612_v26  ;;  %v554_v41 = vld [vmem:[#allocation10 + $0x78] sm:$0xff]  ;;  %v556_v52 = vld [vmem:[#allocation10 + $0x88] sm:$0xff]  ;;  %v557_v61 = vld [vmem:[#allocation10 + $0x90] sm:$0xff] }
  0x90   :  { %991 = vmatpush1.bf16.msra.mxu0 %v990_v33  ;;  %v547_v33 = vld [vmem:[#allocation10 + $0x40] sm:$0xff]  ;;  %v1048_v48 = vpack.c.bf16 %v554_v41, %v552_v40  ;;  %v558_v53 = vld [vmem:[#allocation10 + $0x98] sm:$0xff]  ;;  %v624_v62 = vld [vmem:[#allocation10 + $0x2a8] sm:$0xff] }
  0x91   :  { %1023 = vmatpush1.bf16.msra.mxu1 %v1022_v34  ;;  %993 = vmatprep.subr.bf16.mxu0 %v992_v35  ;;  %v611_v34 = vld [vmem:[#allocation10 + $0x240] sm:$0xff]  ;;  %v613_v35 = vld [vmem:[#allocation10 + $0x250] sm:$0xff]  ;;  %v1046_v43 = vpack.c.bf16 %v549_v37, %v547_v33  ;;  %v1052_v60 = vpack.c.bf16 %v558_v53, %v556_v52  ;;  %v560_v1 = vld [vmem:[#allocation10 + $0xa8] sm:$0xff] }
  0x92   :  { %1025 = vmatprep.subr.bf16.mxu1 %v1024_v39  ;;  %v618_v39 = vld [vmem:[#allocation10 + $0x278] sm:$0xff]  ;;  %v1110_v42 = vpack.c.bf16 %v613_v35, %v611_v34  ;;  %v561_v10 = vld [vmem:[#allocation10 + $0xb0] sm:$0xff]  ;;  %v628_v11 = vld [vmem:[#allocation10 + $0x2c8] sm:$0xff] }
  0x93   :  { %v1112_v44 = vpack.c.bf16 %v618_v39, %v616_v38  ;;  %v562_v2 = vld [vmem:[#allocation10 + $0xb8] sm:$0xff]  ;;  %v564_v13 = vld [vmem:[#allocation10 + $0xc8] sm:$0xff]  ;;  %v565_v22 = vld [vmem:[#allocation10 + $0xd0] sm:$0xff] }
  0x94   :  { %995 = vmatpush1.bf16.msra.mxu0 %v994_v45  ;;  %v551_v45 = vld [vmem:[#allocation10 + $0x60] sm:$0xff]  ;;  %v1056_v9 = vpack.c.bf16 %v562_v2, %v560_v1  ;;  %v566_v14 = vld [vmem:[#allocation10 + $0xd8] sm:$0xff]  ;;  %v632_v0 = vld [vmem:[#allocation10 + $0x2e8] sm:$0xff] }
  0x95   :  { %1027 = vmatpush1.bf16.msra.mxu1 %v1026_v46  ;;  %997 = vmatprep.subr.bf16.mxu0 %v996_v47  ;;  %v615_v46 = vld [vmem:[#allocation10 + $0x260] sm:$0xff]  ;;  %v617_v47 = vld [vmem:[#allocation10 + $0x270] sm:$0xff]  ;;  %v1050_v55 = vpack.c.bf16 %v553_v49, %v551_v45  ;;  %v634_v23 = vld [vmem:[#allocation10 + $0x2f8] sm:$0xff] }
  0x96   :  { %1029 = vmatprep.subr.bf16.mxu1 %v1028_v51  ;;  %v622_v51 = vld [vmem:[#allocation10 + $0x298] sm:$0xff]  ;;  %v1114_v54 = vpack.c.bf16 %v617_v47, %v615_v46  ;;  %v1128_v28 = vpack.c.bf16 %v634_v23, %v632_v0  ;;  %v567_v29 = vld [vmem:[#allocation10 + $0xe0] sm:$0xff]  ;;  %v569_v33 = vld [vmem:[#allocation10 + $0xf0] sm:$0xff] }
  0x97   :  { %v1116_v56 = vpack.c.bf16 %v622_v51, %v620_v50  ;;  %v570_v25 = vld [vmem:[#allocation10 + $0xf8] sm:$0xff]  ;;  %v636_v34 = vld [vmem:[#allocation10 + $0x308] sm:$0xff]  ;;  %v1066_v39 = vpack.c.bf16 %v569_v33, %v567_v29  ;;  %v571_v41 = vld [vmem:[#allocation10 + $0x100] sm:$0xff] }
  0x98   :  { %999 = vmatpush1.bf16.msra.mxu0 %v998_v57  ;;  %v555_v57 = vld [vmem:[#allocation10 + $0x80] sm:$0xff]  ;;  %v638_v35 = vld [vmem:[#allocation10 + $0x318] sm:$0xff]  ;;  %v573_v45 = vld [vmem:[#allocation10 + $0x110] sm:$0xff] }
  0x99   :  { %1031 = vmatpush1.bf16.msra.mxu1 %v1030_v58  ;;  %1001 = vmatprep.subr.bf16.mxu0 %v1000_v59  ;;  %v619_v58 = vld [vmem:[#allocation10 + $0x280] sm:$0xff]  ;;  %v621_v59 = vld [vmem:[#allocation10 + $0x290] sm:$0xff]  ;;  %v1054_v4 = vpack.c.bf16 %v557_v61, %v555_v57  ;;  %v574_v37 = vld [vmem:[#allocation10 + $0x118] sm:$0xff]  ;;  %v1132_v40 = vpack.c.bf16 %v638_v35, %v636_v34  ;;  %v1070_v51 = vpack.c.bf16 %v573_v45, %v571_v41 }
  0x9a   :  { %1033 = vmatprep.subr.bf16.mxu1 %v1032_v63  ;;  %v626_v63 = vld [vmem:[#allocation10 + $0x2b8] sm:$0xff]  ;;  %v1118_v3 = vpack.c.bf16 %v621_v59, %v619_v58  ;;  %v640_v46 = vld [vmem:[#allocation10 + $0x328] sm:$0xff]  ;;  %v575_v53 = vld [vmem:[#allocation10 + $0x120] sm:$0xff] }
  0x9b   :  { %v1120_v5 = vpack.c.bf16 %v626_v63, %v624_v62  ;;  %v642_v47 = vld [vmem:[#allocation10 + $0x338] sm:$0xff]  ;;  %v577_v57 = vld [vmem:[#allocation10 + $0x130] sm:$0xff]  ;;  %v644_v58 = vld [vmem:[#allocation10 + $0x348] sm:$0xff] }
  0x9c   :  { %1003 = vmatpush1.bf16.msra.mxu0 %v1002_v6  ;;  %v559_v6 = vld [vmem:[#allocation10 + $0xa0] sm:$0xff]  ;;  %v578_v49 = vld [vmem:[#allocation10 + $0x138] sm:$0xff]  ;;  %v1136_v52 = vpack.c.bf16 %v642_v47, %v640_v46  ;;  %v1074_v63 = vpack.c.bf16 %v577_v57, %v575_v53  ;;  %v652_v0 = vld [vmem:[#allocation10 + $0x388] sm:$0xff] }
  0x9d   :  { %1035 = vmatpush1.bf16.msra.mxu1 %v1034_v7  ;;  %1101 = vmatprep.subr.bf16.mxu0 %v1100_v8  ;;  %v623_v7 = vld [vmem:[#allocation10 + $0x2a0] sm:$0xff]  ;;  %v625_v8 = vld [vmem:[#allocation10 + $0x2b0] sm:$0xff]  ;;  %v1058_v16 = vpack.c.bf16 %v561_v10, %v559_v6  ;;  %v646_v59 = vld [vmem:[#allocation10 + $0x358] sm:$0xff] }
  0x9e   :  { %1037 = vmatprep.subr.bf16.mxu1 %v1036_v12  ;;  %v630_v12 = vld [vmem:[#allocation10 + $0x2d8] sm:$0xff]  ;;  %v1122_v15 = vpack.c.bf16 %v625_v8, %v623_v7  ;;  %v1140_v1 = vpack.c.bf16 %v646_v59, %v644_v58  ;;  %v579_v2 = vld [vmem:[#allocation10 + $0x140] sm:$0xff]  ;;  %v581_v6 = vld [vmem:[#allocation10 + $0x150] sm:$0xff] }
  0x9f   :  { %432 = vmatmul.mubr.f32.vlgmr.msra.gmra.mrb[0].mxu0 %v95_v18  ;;  %v1124_v17 = vpack.c.bf16 %v630_v12, %v628_v11  ;;  %v582_v61 = vld [vmem:[#allocation10 + $0x158] sm:$0xff]  ;;  %v648_v7 = vld [vmem:[#allocation10 + $0x368] sm:$0xff]  ;;  %v1078_v12 = vpack.c.bf16 %v581_v6, %v579_v2  ;;  %v655_v41 = vld [vmem:[#allocation10 + $0x3a0] sm:$0xff] }
  0xa0   :  { %503 = vmatmul.mubr.f32.vlgmr.msra.gmra.mrb[0].mxu1 %v95_v18  ;;  %1103 = vmatpush1.bf16.msra.mxu0 %v1102_v19  ;;  %v563_v18 = vld [vmem:[#allocation10 + $0xc0] sm:$0xff]  ;;  %v650_v8 = vld [vmem:[#allocation10 + $0x378] sm:$0xff]  ;;  %v656_v34 = vld [vmem:[#allocation10 + $0x3a8] sm:$0xff] }
  0xa1   :  { %1039 = vmatpush1.bf16.msra.mxu1 %v1038_v20  ;;  %1105 = vmatprep.subr.bf16.mxu0 %v1104_v21  ;;  %v627_v19 = vld [vmem:[#allocation10 + $0x2c0] sm:$0xff]  ;;  %v629_v20 = vld [vmem:[#allocation10 + $0x2d0] sm:$0xff]  ;;  %v1060_v21 = vpack.c.bf16 %v566_v14, %v564_v13  ;;  %v1062_v27 = vpack.c.bf16 %v565_v22, %v563_v18  ;;  %v586_v10 = vld [vmem:[#allocation10 + $0x178] sm:$0xff]  ;;  %v1144_v13 = vpack.c.bf16 %v650_v8, %v648_v7 }
  0xa2   :  { %1041 = vmatprep.subr.bf16.mxu1 %v1040_v24  ;;  %v568_v24 = vld [vmem:[#allocation10 + $0xe8] sm:$0xff]  ;;  %v1126_v26 = vpack.c.bf16 %v629_v20, %v627_v19  ;;  %v647_v14 = vld [vmem:[#allocation10 + $0x360] sm:$0xff]  ;;  %v585_v18 = vld [vmem:[#allocation10 + $0x170] sm:$0xff] }
  0xa3   :  { %v590_v22 = vld [vmem:[#allocation10 + $0x198] sm:$0xff]  ;;  %v660_v46 = vld [vmem:[#allocation10 + $0x3c8] sm:$0xff]  ;;  %v659_v53 = vld [vmem:[#allocation10 + $0x3c0] sm:$0xff] }
  0xa4   :  { %1107 = vmatpush1.bf16.msra.mxu0 %v1106_v30  ;;  %v631_v30 = vld [vmem:[#allocation10 + $0x2e0] sm:$0xff]  ;;  %v594_v33 = vld [vmem:[#allocation10 + $0x1b8] sm:$0xff]  ;;  %v664_v58 = vld [vmem:[#allocation10 + $0x3e8] sm:$0xff] }
  0xa5   :  { %1043 = vmatpush1.bf16.msra.mxu1 %v1042_v31  ;;  %1109 = vmatprep.subr.bf16.mxu0 %v1108_v32  ;;  %v633_v31 = vld [vmem:[#allocation10 + $0x2f0] sm:$0xff]  ;;  %v1064_v32 = vpack.c.bf16 %v570_v25, %v568_v24  ;;  %v654_v24 = vld [vmem:[#allocation10 + $0x398] sm:$0xff] }
  0xa6   :  { %1045 = vmatprep.subr.bf16.mxu1 %v1044_v36  ;;  %v572_v36 = vld [vmem:[#allocation10 + $0x108] sm:$0xff]  ;;  %v1130_v38 = vpack.c.bf16 %v633_v31, %v631_v30  ;;  %v1148_v25 = vpack.c.bf16 %v654_v24, %v652_v0  ;;  %v653_v30 = vld [vmem:[#allocation10 + $0x390] sm:$0xff]  ;;  %v598_v45 = vld [vmem:[#allocation10 + $0x1d8] sm:$0xff] }
  0xa7   :  { %v602_v57 = vld [vmem:[#allocation10 + $0x1f8] sm:$0xff]  ;;  %v509_v8 = vld [vmem:[%s1570_s4] sm:$0xf] }
  0xa8   :  { %1111 = vmatpush1.bf16.msra.mxu0 %v1110_v42  ;;  %v635_v42 = vld [vmem:[#allocation10 + $0x300] sm:$0xff]  ;;  %v666_v59 = vld [vmem:[#allocation10 + $0x3f8] sm:$0xff] }
  0xa9   :  { %1047 = vmatpush1.bf16.msra.mxu1 %v1046_v43  ;;  %1113 = vmatprep.subr.bf16.mxu0 %v1112_v44  ;;  %v637_v43 = vld [vmem:[#allocation10 + $0x310] sm:$0xff]  ;;  %v1068_v44 = vpack.c.bf16 %v574_v37, %v572_v36  ;;  %v658_v36 = vld [vmem:[#allocation10 + $0x3b8] sm:$0xff]  ;;  %v591_v37 = vld [vmem:[#allocation10 + $0x1a0] sm:$0xff] }
  0xaa   :  { %1049 = vmatprep.subr.bf16.mxu1 %v1048_v48  ;;  %v576_v48 = vld [vmem:[#allocation10 + $0x128] sm:$0xff]  ;;  %v1134_v50 = vpack.c.bf16 %v637_v43, %v635_v42  ;;  %v657_v42 = vld [vmem:[#allocation10 + $0x3b0] sm:$0xff] }
  0xab   :  { %v1154_v43 = vpack.c.bf16 %v657_v42, %v655_v41 }
  0xac   :  { %1115 = vmatpush1.bf16.msra.mxu0 %v1114_v54  ;;  %v639_v54 = vld [vmem:[#allocation10 + $0x320] sm:$0xff] }
  0xad   :  { %1051 = vmatpush1.bf16.msra.mxu1 %v1050_v55  ;;  %1117 = vmatprep.subr.bf16.mxu0 %v1116_v56  ;;  %v641_v55 = vld [vmem:[#allocation10 + $0x330] sm:$0xff]  ;;  %v1072_v56 = vpack.c.bf16 %v578_v49, %v576_v48  ;;  %v662_v48 = vld [vmem:[#allocation10 + $0x3d8] sm:$0xff]  ;;  %v595_v49 = vld [vmem:[#allocation10 + $0x1c0] sm:$0xff] }
  0xae   :  { %1053 = vmatprep.subr.bf16.mxu1 %v1052_v60  ;;  %v580_v60 = vld [vmem:[#allocation10 + $0x148] sm:$0xff]  ;;  %v1138_v62 = vpack.c.bf16 %v641_v55, %v639_v54  ;;  %v661_v54 = vld [vmem:[#allocation10 + $0x3d0] sm:$0xff] }
  0xaf   :  { %v600_v55 = vld [vmem:[#allocation10 + $0x1e8] sm:$0xff] }
  0xb0   :  { %1119 = vmatpush1.bf16.msra.mxu0 %v1118_v3  ;;  %v643_v3 = vld [vmem:[#allocation10 + $0x340] sm:$0xff] }
  0xb1   :  { %1055 = vmatpush1.bf16.msra.mxu1 %v1054_v4  ;;  %1121 = vmatprep.subr.bf16.mxu0 %v1120_v5  ;;  %v645_v4 = vld [vmem:[#allocation10 + $0x350] sm:$0xff]  ;;  %v1076_v5 = vpack.c.bf16 %v582_v61, %v580_v60  ;;  %v1096_v60 = vpack.c.bf16 %v602_v57, %v600_v55  ;;  %v1160_v61 = vpack.c.bf16 %v666_v59, %v664_v58 }
  0xb2   :  { %1057 = vmatprep.subr.bf16.mxu1 %v1056_v9  ;;  %v584_v9 = vld [vmem:[#allocation10 + $0x168] sm:$0xff]  ;;  %v1142_v11 = vpack.c.bf16 %v645_v4, %v643_v3  ;;  %v665_v3 = vld [vmem:[#allocation10 + $0x3f0] sm:$0xff] }
  0xb4   :  { %1123 = vmatpush1.bf16.msra.mxu0 %v1122_v15  ;;  %v649_v15 = vld [vmem:[#allocation10 + $0x370] sm:$0xff] }
  0xb5   :  { %1059 = vmatpush1.bf16.msra.mxu1 %v1058_v16  ;;  %1125 = vmatprep.subr.bf16.mxu0 %v1124_v17  ;;  %v1080_v16 = vpack.c.bf16 %v586_v10, %v584_v9  ;;  %v583_v17 = vld [vmem:[#allocation10 + $0x160] sm:$0xff]  ;;  %v1146_v19 = vpack.c.bf16 %v649_v15, %v647_v14 }
  0xb6   :  { %1061 = vmatprep.subr.bf16.mxu1 %v1060_v21  ;;  %v1082_v20 = vpack.c.bf16 %v585_v18, %v583_v17  ;;  %v588_v21 = vld [vmem:[#allocation10 + $0x188] sm:$0xff] }
  0xb7   :  { %v1084_v23 = vpack.c.bf16 %v590_v22, %v588_v21 }
  0xb8   :  { %1127 = vmatpush1.bf16.msra.mxu0 %v1126_v26  ;;  %v587_v26 = vld [vmem:[#allocation10 + $0x180] sm:$0xff] }
  0xb9   :  { %1063 = vmatpush1.bf16.msra.mxu1 %v1062_v27  ;;  %1129 = vmatprep.subr.bf16.mxu0 %v1128_v28  ;;  %v589_v27 = vld [vmem:[#allocation10 + $0x190] sm:$0xff]  ;;  %v651_v28 = vld [vmem:[#allocation10 + $0x380] sm:$0xff] }
  0xba   :  { %1065 = vmatprep.subr.bf16.mxu1 %v1064_v32  ;;  %v1086_v29 = vpack.c.bf16 %v589_v27, %v587_v26  ;;  %v1150_v31 = vpack.c.bf16 %v653_v30, %v651_v28  ;;  %v592_v32 = vld [vmem:[#allocation10 + $0x1a8] sm:$0xff]  ;;  %v667_v27 = vld [vmem:[%s1572_s6] sm:$0x3]  ;;  %s1401_s6 = smov [#allocation12]  }
  0xbb   :  { %v1088_v35 = vpack.c.bf16 %v594_v33, %v592_v32  ;;  %s880_s28 = sshll.u32 %s1401_s6, 4  ;;  %s881_s28 = int_to_ptr.vmem [resolvable:$true] %s880_s28 }
  0xbc   :  { %1131 = vmatpush1.bf16.msra.mxu0 %v1130_v38  ;;  %v593_v38 = vld [vmem:[#allocation10 + $0x1b0] sm:$0xff]  ;;  %s1315_s29 = scalar_lea.vmem %s881_s28, 128  ;;  %p1320_p13 = scmp.lt.s32.totalorder %s881_s28, %s881_s28 }
  0xbd   :  { %1067 = vmatpush1.bf16.msra.mxu1 %v1066_v39  ;;  %1133 = vmatprep.subr.bf16.mxu0 %v1132_v40  ;;  %v1152_v39 = vpack.c.bf16 %v658_v36, %v656_v34  ;;  %v1090_v40 = vpack.c.bf16 %v593_v38, %v591_v37  ;;  %p1316_p12 = scmp.ne.s32.totalorder %s881_s28, %s1315_s29  ;;  %p1321_p0 = scmp.lt.s32.totalorder %s1315_s29, %s1315_s29 }
  0xbe   :  { %1069 = vmatprep.subr.bf16.mxu1 %v1068_v44  ;;  %v596_v44 = vld [vmem:[#allocation10 + $0x1c8] sm:$0xff] }
  0xbf   :  { %v1092_v47 = vpack.c.bf16 %v598_v45, %v596_v44  ;;  %p1322_p1 = por %p1321_p0, %p1320_p13 }
  0xc0   :  { %1135 = vmatpush1.bf16.msra.mxu0 %v1134_v50  ;;  %v597_v50 = vld [vmem:[#allocation10 + $0x1d0] sm:$0xff] }
  0xc1   :  { %1071 = vmatpush1.bf16.msra.mxu1 %v1070_v51  ;;  %1137 = vmatprep.subr.bf16.mxu0 %v1136_v52  ;;  %v1156_v51 = vpack.c.bf16 %v662_v48, %v660_v46  ;;  %v1094_v52 = vpack.c.bf16 %v597_v50, %v595_v49  ;;  %p1323_p2 = pnand %p1322_p1, %p1316_p12 }
  0xc2   :  { %1073 = vmatprep.subr.bf16.mxu1 %v1072_v56  ;;  %v1158_v56 = vpack.c.bf16 %v661_v54, %v659_v53 }
  0xc4   :  { %1139 = vmatpush1.bf16.msra.mxu0 %v1138_v62  ;;  %v599_v62 = vld [vmem:[#allocation10 + $0x1e0] sm:$0xff] }
  0xc5   :  { %1075 = vmatpush1.bf16.msra.mxu1 %v1074_v63  ;;  %1141 = vmatprep.subr.bf16.mxu0 %v1140_v1  ;;  %v601_v63 = vld [vmem:[#allocation10 + $0x1f0] sm:$0xff]  ;;  %v663_v1 = vld [vmem:[#allocation10 + $0x3e0] sm:$0xff] }
  0xc6   :  { %1077 = vmatprep.subr.bf16.mxu1 %v1076_v5  ;;  %v1098_v2 = vpack.c.bf16 %v601_v63, %v599_v62  ;;  %v1162_v4 = vpack.c.bf16 %v665_v3, %v663_v1  ;;  %v511_v5 = vlaneseq }
  0xc8   :  { %1143 = vmatpush1.bf16.msra.mxu0 %v1142_v11  ;;  %v512_v6 = vshrl.u32 %v511_v5, 7 }
  0xc9   :  { %1079 = vmatpush1.bf16.msra.mxu1 %v1078_v12  ;;  %1145 = vmatprep.subr.bf16.mxu0 %v1144_v13 }
  0xca   :  { %1081 = vmatprep.subr.bf16.mxu1 %v1080_v16  ;;  %v513_v7 = vsub.s32 0, %v512_v6  ;;  %v517_v9 = vsub.s32 1, %v512_v6  ;;  %v521_v10 = vsub.s32 2, %v512_v6  ;;  %v525_v11 = vsub.s32 3, %v512_v6 }
  0xcc   :  { %1147 = vmatpush1.bf16.msra.mxu0 %v1146_v19  ;;  %v514_v12 = vrot.slane %v509_v8, %v513_v7  ;;  %v518_v13 = vrot.slane %v509_v8, %v517_v9  ;;  %v522_v14 = vrot.slane %v509_v8, %v521_v10  ;;  %v526_v15 = vrot.slane %v509_v8, %v525_v11 }
  0xcd   :  { %1083 = vmatpush1.bf16.msra.mxu1 %v1082_v20  ;;  %1149 = vmatprep.subr.bf16.mxu0 %v1148_v25  ;;  %v672_v28 = vrot.slane %v667_v27, %v513_v7 }
  0xce   :  { %1085 = vmatprep.subr.bf16.mxu1 %v1084_v23 }
  0xd0   :  { %1151 = vmatpush1.bf16.msra.mxu0 %v1150_v31 }
  0xd1   :  { %1087 = vmatpush1.bf16.msra.mxu1 %v1086_v29  ;;  %1153 = vmatprep.subr.bf16.mxu0 %v1152_v39  ;;  %v676_v29 = vrot.slane %v667_v27, %v517_v9 }
  0xd2   :  { %1089 = vmatprep.subr.bf16.mxu1 %v1088_v35 }
  0xd4   :  { %1155 = vmatpush1.bf16.msra.mxu0 %v1154_v43 }
  0xd5   :  { %1091 = vmatpush1.bf16.msra.mxu1 %v1090_v40  ;;  %1157 = vmatprep.subr.bf16.mxu0 %v1156_v51 }
  0xd6   :  { %1093 = vmatprep.subr.bf16.mxu1 %v1092_v47 }
  0xd8   :  { %1159 = vmatpush1.bf16.msra.mxu0 %v1158_v56 }
  0xd9   :  { %1095 = vmatpush1.bf16.msra.mxu1 %v1094_v52  ;;  %1161 = vmatprep.subr.bf16.mxu0 %v1160_v61 }
  0xda   :  { %1097 = vmatprep.subr.bf16.mxu1 %v1096_v60 }
  0xdc   :  { %1163 = vmatpush1.bf16.msra.mxu0 %v1162_v4 }
  0xdd   :  { %1099 = vmatpush1.bf16.msra.mxu1 %v1098_v2 }
 0x172   :  { %v433_v16 = vpop.f32.mrb[0].mxu0 }
 0x173   :  { %v531_v17 = vadd.f32 %v514_v12, %v433_v16  ;;  %v504_v18 = vpop.f32.mrb[0].mxu1  ;;  %v435_v19 = vpop.f32.mrb[1].mxu0 }
 0x174   :  { %v532_v20 = vadd.f32 %v518_v13, %v435_v19  ;;  %v506_v21 = vpop.f32.mrb[1].mxu1  ;;  %v533_v22 = vadd.f32 %v522_v14, %v504_v18 }
 0x175   :  { %v534_v0 = vadd.f32 %v526_v15, %v506_v21  ;;  %1185 = vtanh.f32 %v531_v17 }
 0x176   :  { %1187 = vtanh.f32 %v532_v20 }
 0x177   :  { %1189 = vtanh.f32 %v534_v0 }
 0x178   :  { %1191 = vtanh.f32 %v533_v22 }
 0x17f   :  { %v1186_v23 = vpop.eup %1185 }
 0x180   :  { %v1188_v24 = vpop.eup %1187 }
 0x181   :  { %v1190_v25 = vpop.eup %1189  ;;  %743 = vmatprep.mubr.f32.mxu1 %v1188_v24 }
 0x182   :  { %v1192_v26 = vpop.eup %1191  ;;  %814 = vmatprep.mubr.f32.mxu0 %v1190_v25  ;;  %744 = vmatmul.mubr.f32.vlgmr.msra.gmra.mrb[2].mxu1 %v1186_v23 }
 0x183   :  { %815 = vmatmul.mubr.f32.vlgmr.msra.gmra.mrb[2].mxu0 %v1192_v26 }
 0x255   :  { %v745_v30 = vpop.f32.mrb[2].mxu1 }
 0x256   :  { %v746_v31 = vadd.f32 %v745_v30, %v672_v28  ;;  %v816_v32 = vpop.f32.mrb[2].mxu0  ;;  %v747_v33 = vpop.f32.mrb[3].mxu1 }
 0x257   :  { %v748_v34 = vadd.f32 %v747_v33, %v676_v29  ;;  %v818_v35 = vpop.f32.mrb[3].mxu0 }
 0x258   :  { %v817_v36 = vadd.f32 %v816_v32, %v746_v31 }
 0x259   :  { %v819_v37 = vadd.f32 %v818_v35, %v748_v34 }
 0x25a   :  { %v821_v38 = vmul.f32 %v817_v36, %v817_v36 }
 0x25b   :  { %v834_v39 = vmul.f32 %v819_v37, %v819_v37 }
 0x25c   :  { %822 = vadd.xlane.f32.xlu0 %v821_v38 }
 0x260   :  { %835 = vadd.xlane.f32.xlu0 %v834_v39 }
 0x2e9   :  { %v823_v40 = vpop.xlane.xlu0 %822 }
 0x2ea   :  { %1193 = vrsqrt.f32 %v823_v40  ;;  %vm826_vm0 = vcmp.eq.f32.partialorder %v823_v40, inf  ;;  %v829_v44 = vand.u32 2147483648, %v823_v40  ;;  %vm828_vm1 = vcmp.eq.f32.partialorder %v823_v40, 0.0 }
 0x2ed   :  { %v836_v41 = vpop.xlane.xlu0 %835 }
 0x2ee   :  { %1195 = vrsqrt.f32 %v836_v41  ;;  %vm839_vm2 = vcmp.eq.f32.partialorder %v836_v41, inf  ;;  %v842_v50 = vand.u32 2147483648, %v836_v41  ;;  %vm841_vm3 = vcmp.eq.f32.partialorder %v836_v41, 0.0 }
 0x2f4   :  { %v1194_v42 = vpop.eup %1193 }
 0x2f5   :  { %v825_v43 = vmul.f32 %v1194_v42, %v823_v40 }
 0x2f7   :  { %v827_v45 = vsel %vm826_vm0, %v823_v40, %v825_v43 }
 0x2f8   :  { %v1196_v46 = vpop.eup %1195  ;;  %v830_v47 = vsel %vm828_vm1, %v829_v44, %v827_v45 }
 0x2f9   :  { %v831_v48 = vmax.f32 %v830_v47, 1e-12  ;;  %v838_v49 = vmul.f32 %v1196_v46, %v836_v41 }
 0x2fb   :  { %1197 = vrcp.f32 %v831_v48  ;;  %v840_v51 = vsel %vm839_vm2, %v836_v41, %v838_v49 }
 0x2fc   :  { %v843_v52 = vsel %vm841_vm3, %v842_v50, %v840_v51 }
 0x2fd   :  { %v844_v53 = vmax.f32 %v843_v52, 1e-12 }
 0x2ff   :  { %1199 = vrcp.f32 %v844_v53 }
 0x305   :  { %v1198_v54 = vpop.eup %1197 }
 0x306   :  { %v833_v55 = vmul.f32 %v1198_v54, %v817_v36 }
 0x308   :  { %862 = vst [vmem:[#allocation12] sm:$0xff] %v833_v55 }
 0x309   :  { %v1200_v56 = vpop.eup %1199 }
 0x30a   :  { %v846_v57 = vmul.f32 %v1200_v56, %v819_v37 }
 0x30c   :  { %v847_v58 = vadd.f32 %v846_v57, %v833_v55  ;;  %863 = vst [vmem:[#allocation14] sm:$0xff] %v846_v57 }
 0x30e   :  { %v848_v59 = vmul.f32 %v847_v58, %v847_v58 }
 0x310   :  { %849 = vadd.xlane.f32.xlu1 %v848_v59 }
 0x311   :  { %1326 = shalt.err (!%p1323_p2)
}
 0x312   :  { %s1327_s1 = scalar_lea.hbm %s1574_s8, 128 }
 0x313   :  { %p1328_p3 = scmp.ne.s32.totalorder %s1574_s8, %s1327_s1  ;;  %p1331_p4 = scmp.lt.u32.totalorder %s1327_s1, %s1574_s8 }
 0x315   :  { %p1333_p5 = pnand %p1331_p4, %p1328_p3 }
 0x317   :  { %1336 = shalt.err (!%p1333_p5)
}
 0x318   :  { %883 = dma.vmem_to_hbm [thread:$0]  %s881_s28, 128, %s1574_s8, [#allocation13]  }
 0x319   :  { %s1402_s17 = smov [#allocation14]  }
 0x31a   :  { %s890_s18 = sshll.u32 %s1402_s17, 4  ;;  %s891_s18 = int_to_ptr.vmem [resolvable:$true] %s890_s18 }
 0x31b   :  { %s1337_s19 = scalar_lea.vmem %s891_s18, 128  ;;  %p1342_p7 = scmp.lt.s32.totalorder %s891_s18, %s891_s18 }
 0x31c   :  { %p1338_p6 = scmp.ne.s32.totalorder %s891_s18, %s1337_s19  ;;  %p1343_p8 = scmp.lt.s32.totalorder %s1337_s19, %s1337_s19 }
 0x31e   :  { %p1344_p9 = por %p1343_p8, %p1342_p7 }
 0x320   :  { %p1345_p10 = pnand %p1344_p9, %p1338_p6 }
 0x322   :  { %1348 = shalt.err (!%p1345_p10)
}
 0x323   :  { %s1349_s23 = scalar_lea.hbm %s1575_s9, 128 }
 0x324   :  { %p1350_p11 = scmp.ne.s32.totalorder %s1575_s9, %s1349_s23  ;;  %p1353_p12 = scmp.lt.u32.totalorder %s1349_s23, %s1575_s9 }
 0x326   :  { %p1355_p13 = pnand %p1353_p12, %p1350_p11 }
 0x328   :  { %1358 = shalt.err (!%p1355_p13)
}
 0x329   :  { %893 = dma.vmem_to_hbm [thread:$0]  %s891_s18, 128, %s1575_s9, [#allocation13]  }
 0x32a   :  { %s1403_s25 = smov [#allocation11]  }
 0x32b   :  { %s870_s5 = sshll.u32 %s1403_s25, 4  ;;  %s871_s5 = int_to_ptr.vmem [resolvable:$true] %s870_s5 }
 0x32c   :  { %s1359_s26 = scalar_lea.vmem %s871_s5, 128  ;;  %p1364_p1 = scmp.lt.s32.totalorder %s871_s5, %s871_s5 }
 0x32d   :  { %p1360_p0 = scmp.ne.s32.totalorder %s871_s5, %s1359_s26  ;;  %p1365_p2 = scmp.lt.s32.totalorder %s1359_s26, %s1359_s26 }
 0x32f   :  { %p1366_p3 = por %p1365_p2, %p1364_p1 }
 0x331   :  { %p1367_p4 = pnand %p1366_p3, %p1360_p0 }
 0x39d   :  { %v850_v60 = vpop.xlane.xlu1 %849 }
 0x39e   :  { %1201 = vrsqrt.f32 %v850_v60  ;;  %vm853_vm4 = vcmp.eq.f32.partialorder %v850_v60, inf  ;;  %v856_v63 = vand.u32 2147483648, %v850_v60  ;;  %vm855_vm5 = vcmp.eq.f32.partialorder %v850_v60, 0.0 }
 0x3a8   :  { %v1202_v61 = vpop.eup %1201 }
 0x3a9   :  { %v852_v62 = vmul.f32 %v1202_v61, %v850_v60 }
 0x3ab   :  { %v854_v1 = vsel %vm853_vm4, %v850_v60, %v852_v62 }
 0x3ac   :  { %v857_v2 = vsel %vm855_vm5, %v856_v63, %v854_v1 }
 0x3ad   :  { %v858_v3 = vmax.f32 %v857_v2, 1e-12 }
 0x3af   :  { %1203 = vrcp.f32 %v858_v3 }
 0x3b9   :  { %v1204_v4 = vpop.eup %1203 }
 0x3ba   :  { %v860_v5 = vmul.f32 %v1204_v4, %v847_v58 }
 0x3bc   :  { %861 = vst [vmem:[#allocation11] sm:$0xff] %v860_v5 }
 0x3bd   :  { %1370 = shalt.err (!%p1367_p4)
}
 0x3be   :  { %s1371_s27 = scalar_lea.hbm %s1573_s7, 128 }
 0x3bf   :  { %p1372_p5 = scmp.ne.s32.totalorder %s1573_s7, %s1371_s27  ;;  %p1375_p6 = scmp.lt.u32.totalorder %s1371_s27, %s1573_s7 }
 0x3c1   :  { %p1377_p7 = pnand %p1375_p6, %p1372_p5 }
 0x3c3   :  { %1380 = shalt.err (!%p1377_p7)
}
 0x3c4   :  { %873 = dma.vmem_to_hbm [thread:$0]  %s871_s5, 128, %s1573_s7, [#allocation4]  }
 0x3c5   :  { %1387 = dma.done.wait [#allocation4], 128  }
 0x3c6   :  { %1388 = vsyncadd [#allocation4], 4294967168 }
 0x3c7   :  { %1389 = dma.done.wait [#allocation13], 256  }
 0x3c8   :  { %1390 = vsyncadd [#allocation13], 4294967040 }
 0x3c9   :  { %903 = vsyncpa [#allocation3], 1 }
 0x3ca   :  { %904 = vsyncpa [#allocation6], 1 }
 0x3cb   :  { %905 = vsyncpa [#allocation9], 1 }
 0x3cc   :  { %906 = vsyncpa [#allocation4], 1 }
 0x3cd   :  { %907 = vsyncpa [#allocation13], 1 }

</bundles_post_ra>
